<compile_context>
chip_gen: v7x
topology: tpu7x:2x2x1
jax: 0.10.0
libtpu: 0.0.40
codegen_flags: <defaults>
</compile_context>

<pallas_src>
import functools

import jax
import jax.numpy as jnp
import numpy as np
from jax import lax
from jax.experimental import pallas as pl
from jax.experimental.pallas import tpu as pltpu


def _patchnce_kernel(q_ref, k_ref, loss_ref, *, inv_t, valid_p,
                     assume_normalized):
    """One grid step: Bt bmm-batches x one q-row tile.

    q_ref:    (Bt, Tq,   D)  q rows of this tile (bf16 by default)
    k_ref:    (Bt, Ppad, D)  full k slab of the same bmm batches
    loss_ref: (Bt, 1,    Tq) per-patch loss, lane-dense
    """
    qt = pl.program_id(1)
    bt, tq, dim = q_ref.shape
    p = k_ref.shape[1]

    q = q_ref[...]
    k = k_ref[...]

    # Fold 1/nce_T into the small q operand before the matmul (saves a full
    # (P, Tq) scaling pass); keep the operand dtype so the MXU sees bf16.
    q_scaled = q * jnp.asarray(inv_t, dtype=q.dtype)

    # --- positives -----------------------------------------------------------
    # l_pos / T computed directly as a row-wise dot of the q tile with the
    # matching k rows: O(Bt*Tq*D) work instead of a full-tile (Bt, P, Tq)
    # diag select + P-long sublane reduction.
    q0 = pl.multiple_of(qt * tq, tq)
    k_diag = k_ref[:, pl.ds(q0, tq), :]                          # (Bt, Tq, D)
    l_pos_t = jnp.sum(
        q_scaled.astype(jnp.float32) * k_diag.astype(jnp.float32),
        axis=2).reshape(bt, 1, tq)                               # (Bt, 1, Tq)

    # --- negatives -----------------------------------------------------------
    # s_t[b, j, i] = <k_j, q_i> / T.  NT matmul: the feature dim (lanes) is the
    # contracted dim of BOTH operands (no k.T relayout); the q-row index lands
    # on result lanes so the reductions below are sublane reductions and the
    # output is lane-dense.
    s_t = lax.dot_general(
        k, q_scaled,
        dimension_numbers=(((2,), (2,)), ((0,), (0,))),
        preferred_element_type=jnp.float32)                      # (Bt, P, Tq)

    # Diagonal (positive-pair) positions: one full-tile iota compared against a
    # (1, 1, Tq) row of global q indices (broadcast in the compare) instead of
    # two full-tile int32 iotas + add + compare.
    k_idx = lax.broadcasted_iota(jnp.int32, s_t.shape, 1)
    q_idx_row = lax.broadcasted_iota(jnp.int32, (1, 1, tq), 2) + qt * tq
    diag = k_idx == q_idx_row

    # masked_fill_(diag, -10.0), pre-scaled by 1/T.
    s_neg_t = jnp.where(diag, jnp.float32(-10.0 * inv_t), s_t)
    if valid_p < p:
        # k rows beyond the true npatches are zero padding added by the wrapper
        # so Tq stays 128-aligned; exclude them from the softmax.
        s_neg_t = jnp.where(k_idx >= valid_p, jnp.float32(-1e30), s_neg_t)

    # --- cross entropy with target 0 over [l_pos, s_neg] ---------------------
    #   loss = logsumexp(logits) - l_pos           (all softmax math in f32)
    if assume_normalized:
        # L2-normalised features => cosine similarity <= 1 => all logits <=
        # 1/T; the constant bound removes the full-tile max sweep (opt-in).
        m = jnp.float32(inv_t)
    else:
        m = jnp.maximum(l_pos_t, jnp.max(s_neg_t, axis=1, keepdims=True))
    # TODO(synk): if a bundle dump shows the EUP co-saturating on v6e/v7x, run
    # this exp in bf16 (keep the sum in f32); skip on v5e (no bf16 EUP).
    sumexp = (jnp.exp(l_pos_t - m)
              + jnp.sum(jnp.exp(s_neg_t - m), axis=1, keepdims=True))
    loss_ref[...] = m + jnp.log(sumexp) - l_pos_t


def _vmem_budget_bytes():
    """~85% of this generation's per-core VMEM (64 MiB on v7x, 128 MiB else)."""
    cap = 64 << 20                        # conservative default (v7x per-core)
    try:
        info = pltpu.get_tpu_info()
        cap = int(getattr(info, "vmem_capacity_bytes", cap))
    except Exception:                     # off-TPU / older runtimes
        pass
    return int(cap * 0.85)


def _choose_tiles(bdim, npatches, dim, itemsize, vmem_budget):
    """Pick (Bt, Tq, Ppad, vmem_estimate) under the per-generation VMEM budget.

    Bt   : bmm batches per grid step (amortises the ~0.35us/step overhead and
           tiny DMAs in the common small-P case).
    Tq   : q-row tile.  Whole slab when small; otherwise 512/256/128 (128-
           aligned for the MXU on every generation), shrunk only when the
           footprint exceeds the budget (v7x's 64 MiB may force 256/128 while
           v5e/v6e's 128 MiB keep 512).
    Ppad : npatches rounded up to a multiple of Tq, so large non-128-divisible
           patch counts no longer fall back to an O(P^2) similarity tile.
    """

    def footprint(bt, tq, p_pad):
        sim_tiles = 6 * bt * p_pad * tq * 4            # s_t + f32/i32 temps
        k_slab = 2 * bt * p_pad * dim * itemsize       # double-buffered input
        q_tile = 2 * bt * tq * dim * itemsize
        lpos_tmp = 3 * bt * tq * dim * 4               # f32 upcasts + product
        out_tile = 2 * bt * max(tq, 128) * 4
        return sim_tiles + k_slab + q_tile + lpos_tmp + out_tile + (2 << 20)

    if npatches <= 1024:
        tq_cands = [npatches]                          # single q tile, no pad
    else:
        cands = [(t, -(-npatches // t) * t) for t in (512, 256, 128)]
        cands.sort(key=lambda c: (c[1], -c[0]))        # least padding, then big
        tq_cands = [t for t, _ in cands]

    choice = None
    for tq in tq_cands:
        p_pad = -(-npatches // tq) * tq
        n_qt = p_pad // tq

        bt = max(1, min(bdim, 1024 // max(npatches, 1)))
        while bdim % bt:
            bt -= 1
        # Shrink Bt first if the per-step footprint does not fit.
        while bt > 1 and footprint(bt, tq, p_pad) > vmem_budget:
            bt -= 1
            while bdim % bt:
                bt -= 1
        # Keep at least two grid steps when possible (pipelining + megacore).
        while bt > 1 and (bdim // bt) * n_qt < 2:
            bt -= 1
            while bdim % bt:
                bt -= 1
        # v7x megacore: 2 TensorCores -> prefer an even number of parallel
        # steps when the grid is small so both cores get balanced work.
        total = (bdim // bt) * n_qt
        if bt > 1 and total < 8 and total % 2 == 1:
            b = bt - 1
            while b >= 1:
                if (bdim % b == 0 and ((bdim // b) * n_qt) % 2 == 0
                        and footprint(b, tq, p_pad) <= vmem_budget):
                    bt = b
                    break
                b -= 1

        est = footprint(bt, tq, p_pad)
        choice = (bt, tq, p_pad, est)
        if est <= vmem_budget:
            break
    return choice


def patch_nce_loss(feat_q, feat_k, *, batch_size, nce_T=0.07,
                   nce_includes_all_negatives_from_minibatch=False,
                   mxu_dtype=jnp.bfloat16, assume_normalized=False):
    """Pallas implementation of PatchNCELoss.forward.

    feat_q, feat_k: (num_patches, dim).  Returns the per-patch loss
    (num_patches,) in float32.  By default the similarity matmul runs with
    bf16 operands and f32 accumulation (the native fast MXU path); pass
    mxu_dtype=None to keep the input precision.  assume_normalized=True
    (opt-in) uses the constant logit bound 1/nce_T instead of a computed max
    -- valid for L2-normalised features as produced by CUT's projection head.
    """
    num_patches, dim = feat_q.shape
    bdim = 1 if nce_includes_all_negatives_from_minibatch else batch_size
    assert num_patches % bdim == 0, "num_patches must be divisible by batch dim"
    npatches = num_patches // bdim

    # feat_k is detached in the PyTorch module (forward value unchanged).
    q = feat_q.reshape(bdim, npatches, dim)
    k = lax.stop_gradient(feat_k).reshape(bdim, npatches, dim)

    if mxu_dtype is not None and q.dtype != jnp.dtype(mxu_dtype):
        q = q.astype(mxu_dtype)
        k = k.astype(mxu_dtype)

    itemsize = jnp.dtype(q.dtype).itemsize
    vmem_budget = _vmem_budget_bytes()
    bt, tq, p_pad, vmem_est = _choose_tiles(bdim, npatches, dim, itemsize,
                                            vmem_budget)

    pad = p_pad - npatches
    if pad:
        # Pad q AND k along the patch axis so Tq stays 128-aligned; the kernel
        # masks the padded k columns and the padded q rows are sliced off.
        q = jnp.pad(q, ((0, 0), (0, pad), (0, 0)))
        k = jnp.pad(k, ((0, 0), (0, pad), (0, 0)))

    grid = (bdim // bt, p_pad // tq)
    vmem_limit = int(min(vmem_budget, max(32 << 20, vmem_est + (8 << 20))))

    kernel = functools.partial(_patchnce_kernel, inv_t=1.0 / float(nce_T),
                               valid_p=npatches,
                               assume_normalized=assume_normalized)

    out = pl.pallas_call(
        kernel,
        out_shape=jax.ShapeDtypeStruct((bdim, 1, p_pad), jnp.float32),
        grid=grid,
        in_specs=[
            pl.BlockSpec((bt, tq, dim), lambda bb, qt: (bb, qt, 0)),
            # Full k slab of the batch block; its block index is constant
            # across the q-tile axis, so it is DMA'd once per batch block.
            # TODO(synk): pipeline_mode=pl.Buffered(1) would halve this slab's
            # VMEM (the 2nd buffer is only touched at bb boundaries); left at
            # default depth and accounted for in the VMEM estimate instead.
            pl.BlockSpec((bt, p_pad, dim), lambda bb, qt: (bb, 0, 0)),
        ],
        out_specs=pl.BlockSpec((bt, 1, tq), lambda bb, qt: (bb, 0, qt)),
        compiler_params=pltpu.CompilerParams(
            dimension_semantics=("parallel", "parallel"),
            vmem_limit_bytes=vmem_limit),
    )(q, k)

    if pad:
        out = out[:, :, :npatches]
    return out.reshape(num_patches)


def _reference_patch_nce_loss(feat_q, feat_k, *, batch_size, nce_T=0.07,
                              nce_includes_all_negatives_from_minibatch=False):
    """Pure-JAX (f32) reference mirroring the PyTorch code, for validation."""
    num_patches, dim = feat_q.shape
    l_pos = jnp.sum(feat_q * feat_k, axis=1, keepdims=True)            # (N, 1)
    bdim = 1 if nce_includes_all_negatives_from_minibatch else batch_size
    q = feat_q.reshape(bdim, -1, dim)
    k = feat_k.reshape(bdim, -1, dim)
    npatches = q.shape[1]
    l_neg = jnp.einsum('bpd,bqd->bpq', q, k, precision=lax.Precision.HIGHEST)
    eye = jnp.eye(npatches, dtype=bool)[None]
    l_neg = jnp.where(eye, -10.0, l_neg).reshape(-1, npatches)
    out = jnp.concatenate([l_pos, l_neg], axis=1) / nce_T
    # cross entropy, target 0, reduction='none'
    return jax.scipy.special.logsumexp(out, axis=1) - out[:, 0]


if __name__ == "__main__":
    def make_feats(key, num_patches, dim):
        kq, kk = jax.random.split(key)
        fq = jax.random.normal(kq, (num_patches, dim), dtype=jnp.float32)
        fk = jax.random.normal(kk, (num_patches, dim), dtype=jnp.float32)
        # CUT feeds L2-normalised features into PatchNCE.
        fq = fq / jnp.linalg.norm(fq, axis=1, keepdims=True)
        fk = fk / jnp.linalg.norm(fk, axis=1, keepdims=True)
        return fq, fk

    # --- small canonical case: batch_size=2, 8 patches per image, dim=32 -----
    batch_size, npatches, dim = 2, 8, 32
    feat_q, feat_k = make_feats(jax.random.PRNGKey(0), batch_size * npatches, dim)
    ref = _reference_patch_nce_loss(feat_q, feat_k, batch_size=batch_size,
                                    nce_T=0.07)

    # Default fast path: bf16 MXU operands, f32 accumulation + softmax math.
    loss = jax.block_until_ready(
        patch_nce_loss(feat_q, feat_k, batch_size=batch_size, nce_T=0.07))
    np.testing.assert_allclose(np.asarray(loss), np.asarray(ref),
                               rtol=5e-2, atol=1e-1)   # bf16 quantisation bound

    # Opt-in constant-max path (valid for L2-normalised features).
    loss_n = jax.block_until_ready(
        patch_nce_loss(feat_q, feat_k, batch_size=batch_size, nce_T=0.07,
                       assume_normalized=True))
    np.testing.assert_allclose(np.asarray(loss_n), np.asarray(ref),
                               rtol=5e-2, atol=1e-1)

    # Full-precision path (mxu_dtype=None): tight structural check.
    loss_f32 = jax.block_until_ready(
        patch_nce_loss(feat_q, feat_k, batch_size=batch_size, nce_T=0.07,
                       mxu_dtype=None))
    np.testing.assert_allclose(np.asarray(loss_f32), np.asarray(ref),
                               rtol=1e-4, atol=1e-4)

    # --- q-tiled + padded path: large npatches not divisible by 128 ----------
    batch_size2, npatches2, dim2 = 2, 1100, 32
    feat_q2, feat_k2 = make_feats(jax.random.PRNGKey(1),
                                  batch_size2 * npatches2, dim2)
    ref2 = _reference_patch_nce_loss(feat_q2, feat_k2, batch_size=batch_size2,
                                     nce_T=0.07)
    loss2 = jax.block_until_ready(
        patch_nce_loss(feat_q2, feat_k2, batch_size=batch_size2, nce_T=0.07,
                       mxu_dtype=None))
    np.testing.assert_allclose(np.asarray(loss2), np.asarray(ref2),
                               rtol=1e-3, atol=1e-3)

    print("KERNEL_OK")
</pallas_src>

<mosaic_0001>
module attributes {stable_mosaic.version = 11 : i64} {
  func.func @_patchnce_kernel(%arg0: i32, %arg1: i32, %arg2: memref<1x8x32xbf16, #tpu.memory_space<vmem>>, %arg3: memref<1x8x32xbf16, #tpu.memory_space<vmem>>, %arg4: memref<1x1x8xf32, #tpu.memory_space<vmem>>) attributes {dimension_semantics = [#tpu.dimension_semantics<parallel>, #tpu.dimension_semantics<parallel>], iteration_bounds = array<i64: 2, 1>, scalar_prefetch = 0 : i64, scratch_operands = 0 : i64, tpu.core_type = #tpu.core_type<tc>, window_params = [{transform_indices = @transform_0, window_bounds = array<i64: 1, 8, 32>}, {transform_indices = @transform_1, window_bounds = array<i64: 1, 8, 32>}, {transform_indices = @transform_2, window_bounds = array<i64: 1, 1, 8>}]} {
    %c0 = arith.constant 0 : index
    %c0_0 = arith.constant 0 : index
    %c0_1 = arith.constant 0 : index
    %0 = vector.load %arg2[%c0, %c0_0, %c0_1] : memref<1x8x32xbf16, #tpu.memory_space<vmem>>, vector<1x8x32xbf16>
    %c0_2 = arith.constant 0 : index
    %c0_3 = arith.constant 0 : index
    %c0_4 = arith.constant 0 : index
    %1 = vector.load %arg3[%c0_2, %c0_3, %c0_4] : memref<1x8x32xbf16, #tpu.memory_space<vmem>>, vector<1x8x32xbf16>
    %cst = arith.constant 1.431250e+01 : bf16
    %2 = vector.broadcast %cst : bf16 to vector<1x8x32xbf16>
    %3 = arith.mulf %0, %2 : vector<1x8x32xbf16>
    %c8_i32 = arith.constant 8 : i32
    %4 = arith.muli %arg1, %c8_i32 : i32
    %5 = tpu.assume_multiple %4, 8 : i32
    %c0_5 = arith.constant 0 : index
    %6 = arith.index_cast %5 : i32 to index
    %c0_6 = arith.constant 0 : index
    %7 = vector.load %arg3[%c0_5, %6, %c0_6] : memref<1x8x32xbf16, #tpu.memory_space<vmem>>, vector<1x8x32xbf16>
    %8 = arith.extf %3 : vector<1x8x32xbf16> to vector<1x8x32xf32>
    %9 = arith.extf %7 : vector<1x8x32xbf16> to vector<1x8x32xf32>
    %10 = arith.mulf %8, %9 : vector<1x8x32xf32>
    %cst_7 = arith.constant dense<0.000000e+00> : vector<1x8xf32>
    %11 = vector.multi_reduction <add>, %10, %cst_7 [2] : vector<1x8x32xf32> to vector<1x8xf32>
    %12 = vector.shape_cast %11 : vector<1x8xf32> to vector<1x1x8xf32>
    %cst_8 = arith.constant dense<0.000000e+00> : vector<1x8x8xf32>
    %13 = tpu.matmul %1, %3, %cst_8 {dimension_numbers = #tpu.dot_dimension_numbers<[2], [2], [1], [1], [0, 0, 0, 1, 1, 1], [0], [0]>} : vector<1x8x32xbf16>, vector<1x8x32xbf16>, vector<1x8x8xf32> -> vector<1x8x8xf32>
    %14 = tpu.iota {dimensions = array<i32: 1>} : vector<1x8x8xi32>
    %15 = tpu.iota {dimensions = array<i32: 2>} : vector<1x1x8xi32>
    %c8_i32_9 = arith.constant 8 : i32
    %16 = arith.muli %arg1, %c8_i32_9 : i32
    %17 = vector.broadcast %16 : i32 to vector<1x1x8xi32>
    %18 = arith.addi %15, %17 : vector<1x1x8xi32>
    %19 = vector.broadcast %18 : vector<1x1x8xi32> to vector<1x8x8xi32>
    %20 = arith.cmpi eq, %14, %19 : vector<1x8x8xi32>
    %cst_10 = arith.constant -142.857147 : f32
    %21 = vector.broadcast %cst_10 : f32 to vector<1x8x8xf32>
    %22 = arith.select %20, %21, %13 : vector<1x8x8xi1>, vector<1x8x8xf32>
    %cst_11 = arith.constant dense<0xFF800000> : vector<1x8xf32>
    %23 = vector.multi_reduction <maximumf>, %22, %cst_11 [1] : vector<1x8x8xf32> to vector<1x8xf32>
    %24 = vector.shape_cast %23 : vector<1x8xf32> to vector<1x1x8xf32>
    %25 = arith.maximumf %12, %24 : vector<1x1x8xf32>
    %26 = arith.subf %12, %25 : vector<1x1x8xf32>
    %27 = math.exp %26 : vector<1x1x8xf32>
    %28 = vector.broadcast %25 : vector<1x1x8xf32> to vector<1x8x8xf32>
    %29 = arith.subf %22, %28 : vector<1x8x8xf32>
    %30 = math.exp %29 : vector<1x8x8xf32>
    %cst_12 = arith.constant dense<0.000000e+00> : vector<1x8xf32>
    %31 = vector.multi_reduction <add>, %30, %cst_12 [1] : vector<1x8x8xf32> to vector<1x8xf32>
    %32 = vector.shape_cast %31 : vector<1x8xf32> to vector<1x1x8xf32>
    %33 = arith.addf %27, %32 : vector<1x1x8xf32>
    %34 = math.log %33 : vector<1x1x8xf32>
    %35 = arith.addf %25, %34 : vector<1x1x8xf32>
    %36 = arith.subf %35, %12 : vector<1x1x8xf32>
    %c0_13 = arith.constant 0 : index
    %c0_14 = arith.constant 0 : index
    %c0_15 = arith.constant 0 : index
    %37 = vector.load %arg4[%c0_13, %c0_14, %c0_15] : memref<1x1x8xf32, #tpu.memory_space<vmem>>, vector<1x1x8xf32>
    tpu.vector_store %arg4[%c0_13, %c0_14, %c0_15], %36 {strides = array<i32>} : memref<1x1x8xf32, #tpu.memory_space<vmem>>, vector<1x1x8xf32>,
    return
  }
  func.func @transform_0(%arg0: i32, %arg1: i32) -> (i32, i32, i32) {
    %c0_i32 = arith.constant 0 : i32
    %c0_i32_0 = arith.constant 0 : i32
    return %arg0, %arg1, %c0_i32 : i32, i32, i32
  }
  func.func @transform_1(%arg0: i32, %arg1: i32) -> (i32, i32, i32) {
    %c0_i32 = arith.constant 0 : i32
    %c0_i32_0 = arith.constant 0 : i32
    %c0_i32_1 = arith.constant 0 : i32
    return %arg0, %c0_i32, %c0_i32_0 : i32, i32, i32
  }
  func.func @transform_2(%arg0: i32, %arg1: i32) -> (i32, i32, i32) {
    %c0_i32 = arith.constant 0 : i32
    %c0_i32_0 = arith.constant 0 : i32
    return %arg0, %c0_i32, %arg1 : i32, i32, i32
  }
}

</mosaic_0001>

<bundles_post_ra>
// kernel: tpu_custom_call.1
= control target key start
LH: loop header
LB: loop body
LE: loop exit
PB: predicated region body
PF: predicated region fallthrough
CT: control target
= control target key end

     0   :  { %7 = vsyncpa [#allocation3], 0  ;;  %s961_s0 = inlined_call_operand.hbm [shape: bf16[2,8,32], index: 0, kind: input, shape index: {}]   ;;  %s962_s1 = inlined_call_operand.hbm [shape: bf16[2,8,32], index: 1, kind: input, shape index: {}]   ;;  %s963_s2 = inlined_call_operand.hbm [shape: f32[2,1,8], index: 2, kind: output, shape index: {}]  }
   0x1   :  { %9 = vsyncpa [#allocation3 + $0x1], 0 }
   0x2   :  { %10 = vsyncpa [#allocation6], 0 }
   0x3   :  { %12 = vsyncpa [#allocation6 + $0x1], 0 }
   0x4   :  { %13 = vsyncpa [#allocation4], 0 }
   0x5   :  { %15 = vsyncpa [#allocation4 + $0x1], 0  ;;  %s738_s9 = smov 0   ;;  %s740_s10 = smov 0  }
   0x6   :  { %s742_s11 = smov 0   ;;  %s744_s12 = smov 0  }
   0x7   :  { %s746_s13 = smov 0   ;;  %s748_s14 = smov 0  }
   0x8 LB: > { %s468_s15 = sadd.s32 4294967295, %s715_s14   ;;  %s469_s16 = sadd.s32 4294967294, %s715_s14   ;;  %s715_s14 = sphi %s748_s14, %s21_s14   ;;  %s711_s13 = sphi %s746_s13, %s983_s13   ;;  %s707_s12 = sphi %s744_s12, %s982_s12   ;;  %s703_s11 = sphi %s742_s11, %s981_s11   ;;  %s699_s10 = sphi %s740_s10, %s980_s10   ;;  %s695_s9 = sphi %s738_s9, %s979_s9  }
   0x9   : > { %s33_s17 = sadd.s32 1, %s711_s13  ;;  %s42_s18 = sadd.s32 1, %s703_s11 }
   0xa   : > { %p35_p0 = scmp.ge.s32.totalorder %s33_s17, 2  ;;  %p49_p1 = scmp.ne.s32.totalorder %s703_s11, %s699_s10 }
   0xb   : > { %p50_p2 = scmp.eq.s32.totalorder %s715_s14, 0  ;;  %p55_p3 = scmp.ne.s32.totalorder %s699_s10, %s695_s9 }
   0xc   : > { %s985_s17 = smov (%p35_p0, %s33_s17), 0  ;;  %p56_p5 = scmp.eq.s32.totalorder %s468_s15, 0 }
   0xd   : > { %p779_p4 = por %p50_p2, %p49_p1  ;;  %s37_s20 = ssub.s32 %s711_s13, %s985_s17 }
   0xe   : > { %p107_p6 = scmp.eq.s32.totalorder %s468_s15, 1  ;;  %p40_p7 = scmp.eq.s32.totalorder %s37_s20, 0 }
   0xf   : > { %p785_p8 = por %p56_p5, %p55_p3  ;;  %p113_p10 = scmp.eq.s32.totalorder %s469_s16, 1 }
  0x10   : > { %p789_p9 = por %p107_p6, %p49_p1  ;;  %p508_p13 = scmp.lt.s32.totalorder %s715_s14, 2 }
  0x11   : > { %s967_s21 = scalar_select %p785_p8, 1, 0 }
  0x12   : > { %s968_s22 = scalar_select %p789_p9, 1, 0 }
  0x13   : > { %s794_s23 = scalar_select %p40_p7, %s703_s11, %s42_s18  }
  0x14   : > { %p796_p11 = por %p113_p10, %p55_p3  ;;  %s803_s25 = sand.u32 1, %s703_s11  }
  0x15   : > { %s472_s26 = sshll.u32 %s803_s25, 2  ;;  %s473_s27 = sshll.u32 %s711_s13, 6 }
  0x16   : > { %s969_s24 = scalar_select %p796_p11, 1, 0 }
  0x17   : > { %s812_s30 = scalar_lea.hbm %s961_s0, %s473_s27  ;;  %s137_s3 = scalar_lea.vmem [#allocation2], %s472_s26 }
  0x18   : > { %s145_s4 = sshll.u32 %s137_s3, 4  ;;  %p820_p0 = pnand %p508_p13, %p779_p4  ;;  %s816_s4 = int_to_ptr.vmem [resolvable:$true] %s145_s4 }
  0x19   : > { %s134_s6 = scalar_lea.sflag [#allocation3], %s803_s25  ;;  %s569_s7 = scalar_lea.hbm %s812_s30, 64 }
  0x1a   : > { %p570_p3 = scmp.ne.s32.totalorder %s812_s30, %s569_s7  ;;  %p571_p5 = pneg %p820_p0 }
  0x1b   : > { %s574_s16 = scalar_lea.hbm %s961_s0, 128  ;;  %p575_p4 = scmp.lt.u32.totalorder %s812_s30, %s961_s0 }
  0x1c   : > { %p572_p6 = pnand %p571_p5, %p570_p3  ;;  %p576_p10 = scmp.lt.u32.totalorder %s574_s16, %s569_s7 }
  0x1d   : > { %p578_p12 = scmp.lt.u32.totalorder %s569_s7, %s812_s30 }
  0x1e   : > { %p573_p7 = pneg %p572_p6  ;;  %p577_p13 = por %p576_p10, %p575_p4 }
  0x20   : > { %p579_p1 = por %p578_p12, %p577_p13 }
  0x22   : > { %p580_p2 = pnand %p579_p1, %p573_p7 }
  0x24   : > { %583 = shalt.err (!%p580_p2)
}
  0x25   : > { %s584_s20 = scalar_lea.vmem %s816_s4, 64  ;;  %s717_s28 = smov [#allocation2]  }
  0x26   : > { %p585_p3 = scmp.ne.s32.totalorder %s816_s4, %s584_s20  ;;  %s589_s29 = sshll.u32 %s717_s28, 4  ;;  %s590_s29 = int_to_ptr.vmem [resolvable:$false] %s589_s29 }
  0x27   : > { %s591_s3 = scalar_lea.vmem %s590_s29, 128  ;;  %p592_p9 = scmp.lt.s32.totalorder %s816_s4, %s590_s29 }
  0x28   : > { %p587_p6 = pnand %p585_p3, %p571_p5  ;;  %p593_p4 = scmp.lt.s32.totalorder %s591_s3, %s584_s20 }
  0x2a   : > { %p588_p11 = pneg %p587_p6  ;;  %p594_p10 = por %p593_p4, %p592_p9 }
  0x2c   : > { %p595_p12 = pnand %p594_p10, %p588_p11 }
  0x2e   : > { %598 = shalt.err (!%p595_p12)
}
  0x2f   : > { %500 = dma.hbm_to_vmem [thread:$0]  (!%p820_p0), %s812_s30, 64, %s816_s4, %s134_s6  }
  0x30   : > { %p971_p1 = scmp.lt.s32.totalorder %s715_s14, 3  ;;  %p972_p2 = scmp.ge.s32.totalorder %s715_s14, 1 }
  0x31   : > { %s865_s16 = scalar_lea.hbm %s962_s1, %s473_s27  ;;  %s156_s18 = scalar_lea.vmem [#allocation5], %s472_s26 }
  0x32   : > { %p856_p7 = pnand %p972_p2, %p971_p1  ;;  %s163_s19 = sshll.u32 %s156_s18, 4  ;;  %s164_s19 = int_to_ptr.vmem [resolvable:$true] %s163_s19 }
  0x33   : > { %s153_s30 = scalar_lea.sflag [#allocation6], %s803_s25  ;;  %s599_s4 = scalar_lea.hbm %s865_s16, 64 }
  0x34   : > { %s973_s7 = scalar_select %p856_p7, 1, 0 }
  0x35   : > { %p600_p9 = scmp.ne.s32.totalorder %s865_s16, %s599_s4  ;;  %s604_s27 = scalar_lea.hbm %s962_s1, 128 }
  0x36   : > { %p605_p3 = scmp.lt.u32.totalorder %s865_s16, %s962_s1  ;;  %p606_p6 = scmp.lt.u32.totalorder %s604_s27, %s599_s4 }
  0x37   : > { %p602_p11 = pnand %p600_p9, %p571_p5  ;;  %p608_p10 = scmp.lt.u32.totalorder %s599_s4, %s865_s16 }
  0x38   : > { %p607_p4 = por %p606_p6, %p605_p3 }
  0x39   : > { %p603_p13 = pneg %p602_p11 }
  0x3a   : > { %p609_p12 = por %p608_p10, %p607_p4 }
  0x3c   : > { %p610_p1 = pnand %p609_p12, %p603_p13 }
  0x3e   : > { %613 = shalt.err (!%p610_p1)
}
  0x3f   : > { %s614_s25 = scalar_lea.vmem %s164_s19, 64  ;;  %s718_s26 = smov [#allocation5]  }
  0x40   : > { %p615_p2 = scmp.ne.s32.totalorder %s164_s19, %s614_s25  ;;  %s619_s3 = sshll.u32 %s718_s26, 4  ;;  %s620_s3 = int_to_ptr.vmem [resolvable:$false] %s619_s3 }
  0x41   : > { %s621_s8 = scalar_lea.vmem %s620_s3, 128  ;;  %p622_p8 = scmp.lt.s32.totalorder %s164_s19, %s620_s3 }
  0x42   : > { %p617_p9 = pnand %p615_p2, %p571_p5  ;;  %p623_p7 = scmp.lt.s32.totalorder %s621_s8, %s614_s25 }
  0x44   : > { %p618_p11 = pneg %p617_p9  ;;  %p624_p3 = por %p623_p7, %p622_p8 }
  0x46   : > { %p625_p6 = pnand %p624_p3, %p618_p11 }
  0x48   : > { %628 = shalt.err (!%p625_p6)
}
  0x49   : > { %503 = dma.hbm_to_vmem [thread:$0]  (!%p820_p0), %s865_s16, 64, %s164_s19, %s153_s30  }
  0x4a   : > { %p974_p13 = scmp.ne.s32.totalorder %s973_s7, 0 }
  0x4b   : > { %s892_s15 = sand.u32 (!%p974_p13), 1, %s699_s10   ;;  %p975_p5 = scmp.ne.s32.totalorder (!%p974_p13), %s967_s21, 0 }
  0x4c   : > { %172 = sbr.rel (%p974_p13) target bundleno = 876 (0x36c), region = 28  ;;  %s477_s18 = sshll.u32 (!%p974_p13), %s892_s15, 2 }
  0x4d   : > { %s175_s4 = scalar_lea.sflag (!%p974_p13), [#allocation3], %s892_s15  ;;  %s178_s6 = scalar_lea.vmem (!%p974_p13), [#allocation2], %s477_s18 }
  0x53   : > { %682 = dma.done.wait (%p975_p5), %s175_s4, 64  }
  0x54   : > { %684 = vsyncadd (%p975_p5), %s175_s4, 4294967232  ;;  %s184_s5 = scalar_lea.sflag [#allocation6], %s892_s15  ;;  %s187_s16 = scalar_lea.vmem [#allocation5], %s477_s18 }
  0x55   : > { %686 = dma.done.wait (%p975_p5), %s184_s5, 64  }
  0x56   : > { %688 = vsyncadd (%p975_p5), %s184_s5, 4294967232  ;;  %v719_v0 = vmov 0.0   ;;  %vm720_vm0 = vmmov 0   ;;  %v214_v1 = vld [vmem:[%s178_s6] sm:$0xf]  ;;  %vm226_vm1 = vcmask 261120   ;;  %v276_v10 = vlaneseq }
  0x57   : > { %485 = vmatprep.subr.bf16.mxu0 %v719_v0  ;;  %487 = vmatprep.mubr.msk.bf16.mxu0 %vm720_vm0, %v719_v0  ;;  %v222_v2 = vld [vmem:[%s187_s16] sm:$0xf]  ;;  %v216_v3 = vmul.bf16 1097154917, %v214_v1  ;;  %vm284_vm3 = vcmask 64512   ;;  %v721_v20 = vmov 0  }
  0x58   : > { %v224_v4 = vunpack.c.l.bf16 %v222_v2  ;;  %v215_v9 = vld [vmem:[%s187_s16] sm:$0xf]  ;;  %v277_v11 = vshrl.u32 %v276_v10, 7  ;;  %v279_v12 = vand.u32 127, %v276_v10  ;;  %561 = vset.pattern.permute.xlu1 %v721_v20  ;;  %562 = vset.pattern.permute.xlu0 %v721_v20  ;;  %s480_s21 = sshll.u32 %s707_s12, 4  ;;  %s211_s7 = scalar_lea.vmem [#allocation7], %s892_s15 }
  0x59   : > { %v234_v5 = vsel %vm226_vm1, %v216_v3, 0  ;;  %v223_v6 = vunpack.c.l.bf16 %v216_v3  ;;  %s367_s19 = sshll.u32 %s211_s7, 4  ;;  %vm351_vm4 = vcmask 57344   ;;  %s912_s27 = scalar_lea.hbm %s963_s2, %s480_s21  ;;  %s914_s19 = int_to_ptr.vmem [resolvable:$true] %s367_s19 }
  0x5a   : > { %486 = vmatpush3.bf16.xpose.msra.mxu0 %v234_v5  ;;  %vm282_vm2 = vcmp.eq.s32.totalorder %v277_v11, %v279_v12  ;;  %v307_v29 = vsub.s32 %v279_v12, %v277_v11  ;;  %s354_s28 = scalar_lea.sflag [#allocation4], %s892_s15  ;;  %s629_s29 = scalar_lea.vmem %s914_s19, 16 }
  0x5b   : > { %v225_v7 = vmul.f32 %v224_v4, %v223_v6  ;;  %p630_p8 = scmp.ne.s32.totalorder %s914_s19, %s629_s29  ;;  %p976_p0 = scmp.ne.s32.totalorder %s968_s22, 0 }
  0x5c   : > { %s722_s12 = smov [#allocation7]  }
  0x5d   : > { %v227_v8 = vsel %vm226_vm1, %v225_v7, 0.0  ;;  %p631_p7 = pnand %p630_p8, %p976_p0  ;;  %s633_s25 = sshll.u32 %s722_s12, 4  ;;  %s634_s25 = int_to_ptr.vmem [resolvable:$false] %s633_s25 }
  0x5e   : > { %228 = vadd.xlane.f32.xlu0 %v227_v8  ;;  %s635_s26 = scalar_lea.vmem %s634_s25, 32  ;;  %p636_p10 = scmp.lt.s32.totalorder %s914_s19, %s634_s25 }
  0x5f   : > { %p632_p4 = pneg %p631_p7  ;;  %p637_p12 = scmp.lt.s32.totalorder %s635_s26, %s629_s29 }
  0x61   : > { %488 = vmatmul.mubr.msk.bf16.vlgmr.msra.gmra.mrb[0].mxu0 %vm226_vm1, %v215_v9  ;;  %p638_p1 = por %p637_p12, %p636_p10 }
  0x63   : > { %p639_p2 = pnand %p638_p1, %p632_p4 }
  0xeb   : > { %v229_v26 = vpop.xlane.xlu0 %228 }
 0x134   : > { %v270_v13 = vpop.f32.mrb[0].mxu0 }
 0x135   : > { %v283_v14 = vsel %vm282_vm2, -142.85715, %v270_v13  ;;  %v489_v15 = vpop.f32.mrb[1].mxu0 }
 0x136   : > { %v285_v16 = vsel %vm284_vm3, %v283_v14, -inf  ;;  %v273_v17 = vpop.f32.mrb[2].mxu0 }
 0x137   : > { %v286_v18 = vrot.slane %v285_v16, 4  ;;  %v490_v19 = vpop.f32.mrb[3].mxu0 }
 0x139   : > { %v287_v21 = vmax.f32 %v285_v16, %v286_v18 }
 0x13b   : > { %v288_v22 = vrot.slane %v287_v21, 2 }
 0x13d   : > { %v289_v23 = vmax.f32 %v287_v21, %v288_v22 }
 0x13f   : > { %v290_v24 = vrot.slane %v289_v23, 1 }
 0x141   : > { %v291_v25 = vmax.f32 %v289_v23, %v290_v24 }
 0x143   : > { %294 = vbcast.lane.b32.xlu0 %v291_v25, 256 }
 0x1b5   : > { %v295_v27 = vpop.permute.xlu0 %294 }
 0x1b6   : > { %v297_v28 = vmax.f32 %v229_v26, %v295_v27 }
 0x1b8   : > { %303 = vperm.xlu1 %561, %v297_v28   ;;  %v298_v42 = vsub.f32 %v229_v26, %v297_v28 }
 0x1ba   : > { %v299_v43 = vmul.f32 1.442695, %v298_v42 }
 0x237   : > { %v304_v30 = vpop.permute.xlu1 %303 }
 0x238   : > { %v308_v31 = vrot.slane %v304_v30, %v307_v29 }
 0x23a   : > { %v322_v32 = vsub.f32 %v283_v14, %v308_v31 }
 0x23c   : > { %v323_v33 = vmul.f32 1.442695, %v322_v32 }
 0x23e   : > { %563 = vpow2.f32 %v323_v33 }
 0x23f   : > { %565 = vpow2.f32 %v299_v43 }
 0x248   : > { %v564_v34 = vpop.eup %563 }
 0x249   : > { %v325_v35 = vsel %vm284_vm3, %v564_v34, 0.0  ;;  %v566_v44 = vpop.eup %565 }
 0x24a   : > { %v326_v36 = vrot.slane %v325_v35, 4 }
 0x24c   : > { %v327_v37 = vadd.f32 %v326_v36, %v325_v35 }
 0x24e   : > { %v328_v38 = vrot.slane %v327_v37, 2 }
 0x250   : > { %v329_v39 = vadd.f32 %v328_v38, %v327_v37 }
 0x252   : > { %v330_v40 = vrot.slane %v329_v39, 1 }
 0x254   : > { %v331_v41 = vadd.f32 %v330_v40, %v329_v39 }
 0x256   : > { %334 = vbcast.lane.b32.xlu1 %v331_v41, 256 }
 0x2c8   : > { %v335_v45 = vpop.permute.xlu1 %334 }
 0x2c9   : > { %v337_v46 = vadd.f32 %v566_v44, %v335_v45 }
 0x2cb   : > { %567 = vlog2.f32 %v337_v46 }
 0x2d5   : > { %v568_v47 = vpop.eup %567 }
 0x2d6   : > { %v339_v48 = vmul.f32 0.6931472, %v568_v47 }
 0x2d8   : > { %v340_v49 = vadd.f32 %v339_v48, %v297_v28 }
 0x2da   : > { %v341_v50 = vsub.f32 %v340_v49, %v229_v26 }
 0x2dc   : > { %344 = vperm.xlu1 %561, %v341_v50  }
 0x35b   : > { %v345_v51 = vpop.permute.xlu1 %344 }
 0x35c   : > { %v349_v52 = vrot.slane %v345_v51, %v307_v29 }
 0x35e   : > { %352 = vst.msk [vmem:[%s211_s7] sm:$0x1] %vm351_vm4, %v349_v52 }
 0x35f   : > { %642 = shalt.err (!%p639_p2)
}
 0x360   : > { %s643_s3 = scalar_lea.hbm %s912_s27, 16  ;;  %s647_s18 = scalar_lea.hbm %s963_s2, 32 }
 0x361   : > { %p644_p9 = scmp.ne.s32.totalorder %s912_s27, %s643_s3  ;;  %p648_p6 = scmp.lt.u32.totalorder %s912_s27, %s963_s2 }
 0x362   : > { %p649_p13 = scmp.lt.u32.totalorder %s647_s18, %s643_s3  ;;  %p651_p8 = scmp.lt.u32.totalorder %s643_s3, %s912_s27 }
 0x363   : > { %p645_p11 = pnand %p644_p9, %p976_p0 }
 0x364   : > { %p650_p5 = por %p649_p13, %p648_p6 }
 0x365   : > { %p646_p3 = pneg %p645_p11 }
 0x366   : > { %p652_p7 = por %p651_p8, %p650_p5 }
 0x368   : > { %p653_p4 = pnand %p652_p7, %p646_p3 }
 0x36a   : > { %656 = shalt.err (!%p653_p4)
}
 0x36b   : > { %495 = dma.vmem_to_hbm [thread:$0]  (%p976_p0), %s914_s19, 16, %s912_s27, %s354_s28  }
 0x36c PF: > { %s379_s5 = sand.u32 1, %s695_s9   ;;  %p977_p10 = scmp.ne.s32.totalorder %s969_s24, 0 }
 0x36d   : > { %p978_p12 = scmp.ge.s32.totalorder %s715_s14, 2  ;;  %s380_s16 = scalar_lea.sflag [#allocation4], %s379_s5 }
 0x36f   : > { %p505_p1 = pnand %p978_p12, %p977_p10 }
 0x371   : > { %690 = dma.done.wait (!%p505_p1), %s380_s16, 16  }
 0x372   : > { %692 = vsyncadd (!%p505_p1), %s380_s16, 4294967280  ;;  %s21_s14 = sadd.s32 1, %s715_s14   ;;  %s979_s9 = smov %s699_s10 }
 0x373   : > { %p18_p2 = scmp.ge.s32.totalorder %s21_s14, 4   ;;  %s980_s10 = smov %s703_s11 }
 0x374   : > { %s981_s11 = smov %s794_s23  ;;  %s982_s12 = smov %s711_s13 }
 0x375   : > { %s983_s13 = smov %s985_s17  ;;  %20 = sbr.rel (!%p18_p2) target bundleno = 8 (0x8), region = 87 }
 0x37c   :  { %384 = vsyncpa [#allocation3], 1 }
 0x37d   :  { %386 = vsyncpa [#allocation3 + $0x1], 1 }
 0x37e   :  { %387 = vsyncpa [#allocation6], 1 }
 0x37f   :  { %389 = vsyncpa [#allocation6 + $0x1], 1 }
 0x380   :  { %390 = vsyncpa [#allocation4], 1 }
 0x381   :  { %392 = vsyncpa [#allocation4 + $0x1], 1 }

</bundles_post_ra>
